<compile_context>
chip_gen: v5e
topology: v5e:2x2
jax: 0.10.0
libtpu: 0.0.40
codegen_flags: <defaults>
</compile_context>

<pallas_src>
import functools

import jax
import jax.numpy as jnp
from jax.experimental import pallas as pl
from jax.experimental.pallas import tpu as pltpu


# ----------------------------------------------------------------------------
# Kernels: per-row LayerNorm over the last dim of a (row_tile, D) block.
# ----------------------------------------------------------------------------
def _ln_kernel_bias(x_ref, w_ref, b_ref, o_ref, *, eps):
    x = x_ref[...].astype(jnp.float32)                   # (row_tile, D) in f32
    mean = jnp.mean(x, axis=-1, keepdims=True)           # (row_tile, 1)
    xc = x - mean
    var = jnp.mean(xc * xc, axis=-1, keepdims=True)      # biased var == F.layer_norm
    inv = jax.lax.rsqrt(var + eps)
    o_ref[...] = (xc * inv * w_ref[...] + b_ref[...]).astype(o_ref.dtype)


def _ln_kernel_nobias(x_ref, w_ref, o_ref, *, eps):
    x = x_ref[...].astype(jnp.float32)
    mean = jnp.mean(x, axis=-1, keepdims=True)
    xc = x - mean
    var = jnp.mean(xc * xc, axis=-1, keepdims=True)
    inv = jax.lax.rsqrt(var + eps)
    o_ref[...] = (xc * inv * w_ref[...]).astype(o_ref.dtype)


# ----------------------------------------------------------------------------
# Helpers (all trace-time Python on static shapes)
# ----------------------------------------------------------------------------
def _round_up(x, m):
    return ((x + m - 1) // m) * m


def _sublane_multiple(dtype):
    # 8 sublanes of 32-bit; sub-32-bit dtypes pack along sublanes.
    return max(8, 32 // max(jnp.dtype(dtype).itemsize, 1))


def _vmem_capacity_bytes():
    try:
        cap = getattr(pltpu.get_tpu_info(), "vmem_capacity_bytes", None)
        if cap:
            return int(cap)
    except Exception:
        pass
    return 64 << 20  # conservative fallback (v7x per-TC VMEM)


# ----------------------------------------------------------------------------
# Wrapper
# ----------------------------------------------------------------------------
@functools.partial(jax.jit, static_argnames=("eps",))
def layer_norm(x, weight, bias=None, eps=1e-5):
    """F.layer_norm(x, (D,), weight, bias, eps) over the last dimension."""
    orig_shape = x.shape
    D = orig_shape[-1]
    x2 = x.reshape(-1, D)
    N = x2.shape[0]

    itemsize = jnp.dtype(x.dtype).itemsize
    sub = _sublane_multiple(x.dtype)

    # Per-generation budget: ~4 MiB per x block on v7x (64 MiB VMEM),
    # ~8 MiB on v5e/v6e (128 MiB VMEM).
    vmem_cap = _vmem_capacity_bytes()
    block_budget = max(1 << 20, vmem_cap // 16)

    # Biggest dtype-aligned row tile that fits the block budget ...
    max_rows_by_vmem = max(sub, (block_budget // max(D * itemsize, 1)) // sub * sub)
    # TODO(synk): for extremely large D (sub*D*itemsize > block budget) a
    # feature-tiled two-pass reduction would be needed; here the floor just
    # hands the oversized block to the compiler.
    # ... but keep >= ~8 grid steps so v7x's 2 TensorCores both get work,
    # and never exceed the (sublane-rounded) number of rows.
    rows_for_steps = max(sub, _round_up(pl.cdiv(N, 8), sub))
    row_tile = min(2048, max_rows_by_vmem, rows_for_steps, _round_up(N, sub))

    grid = (pl.cdiv(N, row_tile),)  # ragged last block: OOB rows masked by Pallas

    # Scoped-VMEM limit: in(2x) + out(2x) double buffers, w/b(2x), f32 temps.
    est = (4 * row_tile * D * itemsize        # x + out, double buffered
           + 4 * D * 4                        # weight/bias f32, double buffered
           + 2 * row_tile * D * 4             # f32 upcast + normalized temp
           + (2 << 20))                       # slack
    vmem_limit = int(min(vmem_cap, max(est, 32 << 20)))

    w = jnp.asarray(weight, jnp.float32).reshape(1, D)

    # NOTE: for D not a multiple of 128 the output store is a masked partial
    # store; padding D on the host is only worth it for very hot small-D paths.
    x_spec = pl.BlockSpec((row_tile, D), lambda i: (i, 0))
    wb_spec = pl.BlockSpec((1, D), lambda i: (0, 0))       # grid-invariant
    o_spec = pl.BlockSpec((row_tile, D), lambda i: (i, 0))
    out_shape = jax.ShapeDtypeStruct((N, D), x.dtype)
    cparams = pltpu.CompilerParams(
        dimension_semantics=("parallel",),   # rows independent -> megacore shardable
        vmem_limit_bytes=vmem_limit,
    )

    if bias is None:
        out = pl.pallas_call(
            functools.partial(_ln_kernel_nobias, eps=eps),
            out_shape=out_shape,
            grid_spec=pltpu.PrefetchScalarGridSpec(
                num_scalar_prefetch=0,
                grid=grid,
                in_specs=[x_spec, wb_spec],
                out_specs=o_spec,
            ),
            compiler_params=cparams,
        )(x2, w)
    else:
        b = jnp.asarray(bias, jnp.float32).reshape(1, D)
        out = pl.pallas_call(
            functools.partial(_ln_kernel_bias, eps=eps),
            out_shape=out_shape,
            grid_spec=pltpu.PrefetchScalarGridSpec(
                num_scalar_prefetch=0,
                grid=grid,
                in_specs=[x_spec, wb_spec, wb_spec],
                out_specs=o_spec,
            ),
            compiler_params=cparams,
        )(x2, w, b)

    return out.reshape(orig_shape)


# ----------------------------------------------------------------------------
# Self-test
# ----------------------------------------------------------------------------
def _layer_norm_ref(x, w, b, eps=1e-5):
    x = x.astype(jnp.float32)
    mean = jnp.mean(x, axis=-1, keepdims=True)
    var = jnp.mean((x - mean) ** 2, axis=-1, keepdims=True)
    y = (x - mean) * jax.lax.rsqrt(var + eps) * w
    return y + b if b is not None else y


if __name__ == "__main__":
    B, T, D = 2, 8, 32

    key = jax.random.PRNGKey(0)
    kx, kw, kb = jax.random.split(key, 3)
    x = jax.random.normal(kx, (B, T, D), jnp.float32)
    weight = jnp.ones((D,), jnp.float32) + 0.1 * jax.random.normal(kw, (D,), jnp.float32)
    bias = 0.1 * jax.random.normal(kb, (D,), jnp.float32)

    # bias=True / bias=False (PyTorch LayerNorm(ndim, bias=False)) cases.
    y_bias = layer_norm(x, weight, bias)
    y_nobias = layer_norm(x, weight, None)

    # Ragged grid (N=21 not a multiple of the row tile) — exercises the
    # cdiv + masked-last-block path that replaced the host pad/slice.
    x_rag = jax.random.normal(jax.random.PRNGKey(1), (3, 7, D), jnp.float32)
    y_rag = layer_norm(x_rag, weight, bias)

    # bf16 input — exercises the dtype-aware tile/sublane path.
    x_bf16 = x.astype(jnp.bfloat16)
    y_bf16 = layer_norm(x_bf16, weight, bias)

    jax.block_until_ready((y_bias, y_nobias, y_rag, y_bf16))

    assert y_bias.shape == (B, T, D), y_bias.shape
    assert y_bias.dtype == jnp.float32
    assert jnp.allclose(y_bias, _layer_norm_ref(x, weight, bias), atol=1e-5, rtol=1e-5)
    assert jnp.allclose(y_nobias, _layer_norm_ref(x, weight, None), atol=1e-5, rtol=1e-5)
    assert jnp.allclose(y_rag, _layer_norm_ref(x_rag, weight, bias), atol=1e-5, rtol=1e-5)
    assert y_bf16.dtype == jnp.bfloat16
    ref_bf16_in = _layer_norm_ref(x_bf16.astype(jnp.float32), weight, bias)
    assert jnp.allclose(y_bf16.astype(jnp.float32), ref_bf16_in, atol=5e-2, rtol=5e-2)
    print("KERNEL_OK")
</pallas_src>

<mosaic_0001>
module attributes {stable_mosaic.version = 11 : i64} {
  func.func @_ln_kernel_bias(%arg0: i32, %arg1: memref<8x32xf32, #tpu.memory_space<vmem>>, %arg2: memref<1x32xf32, #tpu.memory_space<vmem>>, %arg3: memref<1x32xf32, #tpu.memory_space<vmem>>, %arg4: memref<8x32xf32, #tpu.memory_space<vmem>>) attributes {dimension_semantics = [#tpu.dimension_semantics<parallel>], iteration_bounds = array<i64: 2>, scalar_prefetch = 0 : i64, scratch_operands = 0 : i64, tpu.core_type = #tpu.core_type<tc>, window_params = [{transform_indices = @transform_0, window_bounds = array<i64: 8, 32>}, {pipeline_mode = #tpu.pipeline_mode<synchronous>, transform_indices = @transform_1, window_bounds = array<i64: 1, 32>}, {pipeline_mode = #tpu.pipeline_mode<synchronous>, transform_indices = @transform_2, window_bounds = array<i64: 1, 32>}, {transform_indices = @transform_3, window_bounds = array<i64: 8, 32>}]} {
    %c0 = arith.constant 0 : index
    %c0_0 = arith.constant 0 : index
    %0 = vector.load %arg1[%c0, %c0_0] : memref<8x32xf32, #tpu.memory_space<vmem>>, vector<8x32xf32>
    %cst = arith.constant dense<0.000000e+00> : vector<8xf32>
    %1 = vector.multi_reduction <add>, %0, %cst [1] : vector<8x32xf32> to vector<8xf32>
    %2 = vector.shape_cast %1 : vector<8xf32> to vector<8x1xf32>
    %cst_1 = arith.constant 3.200000e+01 : f32
    %3 = vector.broadcast %cst_1 : f32 to vector<8x1xf32>
    %4 = arith.divf %2, %3 : vector<8x1xf32>
    %5 = vector.broadcast %4 : vector<8x1xf32> to vector<8x32xf32>
    %6 = arith.subf %0, %5 : vector<8x32xf32>
    %7 = arith.mulf %6, %6 : vector<8x32xf32>
    %cst_2 = arith.constant dense<0.000000e+00> : vector<8xf32>
    %8 = vector.multi_reduction <add>, %7, %cst_2 [1] : vector<8x32xf32> to vector<8xf32>
    %9 = vector.shape_cast %8 : vector<8xf32> to vector<8x1xf32>
    %cst_3 = arith.constant 3.200000e+01 : f32
    %10 = vector.broadcast %cst_3 : f32 to vector<8x1xf32>
    %11 = arith.divf %9, %10 : vector<8x1xf32>
    %cst_4 = arith.constant 9.99999974E-6 : f32
    %12 = vector.broadcast %cst_4 : f32 to vector<8x1xf32>
    %13 = arith.addf %11, %12 : vector<8x1xf32>
    %14 = math.rsqrt %13 : vector<8x1xf32>
    %15 = vector.broadcast %14 : vector<8x1xf32> to vector<8x32xf32>
    %16 = arith.mulf %6, %15 : vector<8x32xf32>
    %c0_5 = arith.constant 0 : index
    %c0_6 = arith.constant 0 : index
    %17 = vector.load %arg2[%c0_5, %c0_6] : memref<1x32xf32, #tpu.memory_space<vmem>>, vector<1x32xf32>
    %18 = vector.broadcast %17 : vector<1x32xf32> to vector<8x32xf32>
    %19 = arith.mulf %16, %18 : vector<8x32xf32>
    %c0_7 = arith.constant 0 : index
    %c0_8 = arith.constant 0 : index
    %20 = vector.load %arg3[%c0_7, %c0_8] : memref<1x32xf32, #tpu.memory_space<vmem>>, vector<1x32xf32>
    %21 = vector.broadcast %20 : vector<1x32xf32> to vector<8x32xf32>
    %22 = arith.addf %19, %21 : vector<8x32xf32>
    %c0_9 = arith.constant 0 : index
    %c0_10 = arith.constant 0 : index
    %23 = vector.load %arg4[%c0_9, %c0_10] : memref<8x32xf32, #tpu.memory_space<vmem>>, vector<8x32xf32>
    tpu.vector_store %arg4[%c0_9, %c0_10], %22 {strides = array<i32>} : memref<8x32xf32, #tpu.memory_space<vmem>>, vector<8x32xf32>,
    return
  }
  func.func @transform_0(%arg0: i32) -> (i32, i32) {
    %c0_i32 = arith.constant 0 : i32
    %c0_i32_0 = arith.constant 0 : i32
    return %arg0, %c0_i32 : i32, i32
  }
  func.func @transform_1(%arg0: i32) -> (i32, i32) {
    %c0_i32 = arith.constant 0 : i32
    %c0_i32_0 = arith.constant 0 : i32
    %c0_i32_1 = arith.constant 0 : i32
    return %c0_i32, %c0_i32_0 : i32, i32
  }
  func.func @transform_2(%arg0: i32) -> (i32, i32) {
    %c0_i32 = arith.constant 0 : i32
    %c0_i32_0 = arith.constant 0 : i32
    %c0_i32_1 = arith.constant 0 : i32
    return %c0_i32, %c0_i32_0 : i32, i32
  }
  func.func @transform_3(%arg0: i32) -> (i32, i32) {
    %c0_i32 = arith.constant 0 : i32
    %c0_i32_0 = arith.constant 0 : i32
    return %arg0, %c0_i32 : i32, i32
  }
}

</mosaic_0001>

<bundles_post_ra>
// kernel: layer_norm.1
= control target key start
LH: loop header
LB: loop body
LE: loop exit
PB: predicated region body
PF: predicated region fallthrough
CT: control target
= control target key end

     0   :  { %8 = vsyncpa [#allocation3], 0  ;;  %s640_s0 = inlined_call_operand.hbm [shape: f32[16,32], index: 0, kind: input, shape index: {}]   ;;  %s641_s1 = inlined_call_operand.vmem [shape: f32[1,32], index: 1, kind: input, shape index: {}]   ;;  %s642_s2 = inlined_call_operand.vmem [shape: f32[1,32], index: 2, kind: input, shape index: {}]   ;;  %s643_s3 = inlined_call_operand.hbm [shape: f32[16,32], index: 3, kind: output, shape index: {}]  }
   0x1   :  { %10 = vsyncpa [#allocation3 + $0x1], 0 }
   0x2   :  { %11 = vsyncpa [#allocation4], 0 }
   0x3   :  { %13 = vsyncpa [#allocation4 + $0x1], 0  ;;  %s500_s12 = smov 0   ;;  %s502_s13 = smov 0  }
   0x4   :  { %s504_s14 = smov 0   ;;  %s506_s15 = smov 0  }
   0x5 LB: > { %s521_s16 = sadd.s32 4294967295, %s477_s15   ;;  %s316_s17 = sadd.s32 4294967294, %s477_s15   ;;  %s477_s15 = sphi %s506_s15, %s653_s15   ;;  %s473_s14 = sphi %s504_s14, %s652_s14   ;;  %s469_s13 = sphi %s502_s13, %s651_s13   ;;  %s465_s12 = sphi %s500_s12, %s650_s12  }
   0x6   : > { %s525_s18 = sadd.s32 1, %s477_s15   ;;  %s26_s19 = sadd.s32 1, %s473_s14 }
   0x7   : > { %s23_s20 = ssub.s32 %s477_s15, %s525_s18  ;;  %p33_p0 = scmp.ne.s32.totalorder %s473_s14, %s469_s13 }
   0x8   : > { %p24_p1 = scmp.eq.s32.totalorder %s23_s20, 0  ;;  %p34_p2 = scmp.eq.s32.totalorder %s477_s15, 0 }
   0x9   : > { %p39_p3 = scmp.ne.s32.totalorder %s469_s13, %s465_s12  ;;  %p40_p4 = scmp.eq.s32.totalorder %s521_s16, 0 }
   0xa   : > { %s537_s21 = scalar_select %p24_p1, %s473_s14, %s26_s19  }
   0xb   : > { %p539_p5 = por %p34_p2, %p33_p0  ;;  %p543_p6 = por %p40_p4, %p39_p3 }
   0xc   : > { %p105_p7 = scmp.eq.s32.totalorder %s521_s16, 1  ;;  %p111_p8 = scmp.eq.s32.totalorder %s316_s17, 1 }
   0xd   : > { %p340_p10 = scmp.lt.s32.totalorder %s477_s15, 2  ;;  %s137_s26 = sand.u32 1, %s473_s14  }
   0xe   : > { %p550_p11 = por %p105_p7, %p33_p0  ;;  %p554_p12 = por %p111_p8, %p39_p3 }
   0xf   : > { %s320_s27 = sshll.u32 %s477_s15, 3  ;;  %s319_s28 = sshll.u32 %s137_s26, 3 }
  0x10   : > { %s145_s4 = scalar_lea.hbm %s640_s0, %s320_s27  ;;  %s141_s6 = scalar_lea.vmem [#allocation2], %s319_s28 }
  0x11   : > { %s147_s5 = sshll.u32 %s145_s4, 4  ;;  %s149_s7 = sshll.u32 %s141_s6, 4  ;;  %s148_s5 = int_to_ptr.hbm [resolvable:$true] %s147_s5  ;;  %s150_s7 = int_to_ptr.vmem [resolvable:$true] %s149_s7 }
  0x12   : > { %p565_p13 = pnand %p340_p10, %p539_p5  ;;  %p321_p0 = scmp.ge.s32.totalorder %s477_s15, 1 }
  0x13   : > { %p154_p1 = scmp.lt.s32.totalorder %s477_s15, 3  ;;  %s138_s9 = scalar_lea.sflag [#allocation3], %s137_s26 }
  0x14   : > { %s381_s10 = sshra.s32 %s148_s5, 4  ;;  %p385_p3 = pneg %p565_p13  ;;  %s382_s10 = int_to_ptr.hbm [resolvable:$true] %s381_s10 }
  0x15   : > { %s383_s11 = scalar_lea.hbm %s382_s10, 8  ;;  %s388_s20 = scalar_lea.hbm %s640_s0, 16 }
  0x16   : > { %p384_p2 = scmp.ne.s32.totalorder %s382_s10, %s383_s11  ;;  %p389_p5 = scmp.lt.s32.totalorder %s382_s10, %s640_s0 }
  0x17   : > { %p390_p8 = scmp.lt.s32.totalorder %s388_s20, %s383_s11 }
  0x18   : > { %p386_p4 = pnand %p385_p3, %p384_p2 }
  0x19   : > { %p391_p10 = por %p390_p8, %p389_p5 }
  0x1a   : > { %p387_p7 = pneg %p386_p4 }
  0x1c   : > { %p392_p9 = pnand %p391_p10, %p387_p7 }
  0x1e   : > { %395 = shalt.err (!%p392_p9)
}
  0x1f   : > { %335 = dma.hbm_to_vmem [thread:$0]  (!%p565_p13), %s148_s5, 128, %s150_s7, %s138_s9  }
  0x20   : > { %p155_p2 = pnand %p321_p0, %p154_p1 }
  0x21   : > { %s586_s26 = sand.u32 (!%p155_p2), 1, %s469_s13  }
  0x22   : > { %158 = sbr.rel (%p155_p2) target bundleno = 312 (0x138), region = 32  ;;  %s322_s28 = sshll.u32 (!%p155_p2), %s586_s26, 3 }
  0x23   : > { %s161_s29 = scalar_lea.sflag (!%p155_p2), [#allocation3], %s586_s26  ;;  %s164_s30 = scalar_lea.vmem (!%p155_p2), [#allocation2], %s322_s28 }
  0x27   : > { %456 = dma.done.wait (%p543_p6), %s161_s29, 128  }
  0x28   : > { %458 = vsyncadd (%p543_p6), %s161_s29, 4294967168  ;;  %vm189_vm0 = vcmask 261120   ;;  %v188_v0 = vld [vmem:[%s164_s30] sm:$0xff]  ;;  %v479_v2 = vmov 32.0   ;;  %s325_s23 = sshll.u32 %s521_s16, 3  ;;  %s187_s16 = scalar_lea.vmem [#allocation5], %s322_s28 }
  0x29   : > { %v190_v1 = vsel %vm189_vm0, %v188_v0, 0.0  ;;  %377 = vrcp.f32 %v479_v2  ;;  %v375_v23 = vld [vmem:[%s641_s1] ss:$0 sm:$0xff]  ;;  %s241_s8 = scalar_lea.hbm %s643_s3, %s325_s23  ;;  %s243_s11 = sshll.u32 %s187_s16, 4  ;;  %s244_s11 = int_to_ptr.vmem [resolvable:$true] %s243_s11 }
  0x2a   : > { %191 = vadd.xlane.f32.xlu0 %v190_v1  ;;  %v376_v26 = vld [vmem:[%s642_s2] ss:$0 sm:$0xff]  ;;  %s245_s17 = sshll.u32 %s241_s8, 4  ;;  %s231_s19 = scalar_lea.sflag [#allocation4], %s586_s26  ;;  %s246_s17 = int_to_ptr.hbm [resolvable:$true] %s245_s17 }
  0x2b   : > { %s425_s20 = sshra.s32 %s246_s17, 4  ;;  %s431_s28 = scalar_lea.hbm %s643_s3, 16  ;;  %s426_s20 = int_to_ptr.hbm [resolvable:$true] %s425_s20 }
  0x2c   : > { %s427_s22 = scalar_lea.hbm %s426_s20, 8  ;;  %p432_p0 = scmp.lt.s32.totalorder %s426_s20, %s643_s3 }
  0x2d   : > { %p428_p6 = scmp.ne.s32.totalorder %s426_s20, %s427_s22  ;;  %p433_p1 = scmp.lt.s32.totalorder %s431_s28, %s427_s22 }
  0x2f   : > { %v378_v3 = vpop.eup %377  ;;  %p429_p9 = pnand %p428_p6, %p550_p11  ;;  %p434_p3 = por %p433_p1, %p432_p0 }
  0x30   : > { %v194_v4 = vmul.f32 32.0, %v378_v3  ;;  %vm198_vm1 = vweird.f32 %v378_v3 }
  0x31   : > { %p430_p13 = pneg %p429_p9 }
  0x32   : > { %v195_v5 = vsub.f32 1.0, %v194_v4 }
  0x33   : > { %p435_p4 = pnand %p434_p3, %p430_p13 }
  0x34   : > { %v196_v6 = vmul.f32 %v378_v3, %v195_v5 }
  0x36   : > { %v197_v7 = vadd.f32 %v378_v3, %v196_v6 }
  0x38   : > { %v199_v8 = vsel %vm198_vm1, %v378_v3, %v197_v7 }
  0x9d   : > { %v192_v9 = vpop.xlane.xlu0 %191 }
  0x9e   : > { %v200_v10 = vmul.f32 %v199_v8, %v192_v9 }
  0xa0   : > { %v201_v11 = vsub.f32 %v188_v0, %v200_v10 }
  0xa2   : > { %v202_v12 = vmul.f32 %v201_v11, %v201_v11 }
  0xa4   : > { %v203_v13 = vsel %vm189_vm0, %v202_v12, 0.0 }
  0xa5   : > { %204 = vadd.xlane.f32.xlu0 %v203_v13 }
 0x118   : > { %v205_v14 = vpop.xlane.xlu0 %204 }
 0x119   : > { %v206_v15 = vmul.f32 %v205_v14, %v199_v8 }
 0x11b   : > { %v207_v16 = vadd.f32 1e-05, %v206_v15 }
 0x11d   : > { %379 = vrsqrt.f32 %v207_v16  ;;  %vm214_vm3 = vweird.f32 %v207_v16 }
 0x123   : > { %v380_v17 = vpop.eup %379 }
 0x124   : > { %v209_v18 = vmul.f32 %v380_v17, %v207_v16  ;;  %vm215_vm2 = vweird.f32 %v380_v17 }
 0x125   : > { %vm216_vm4 = vmor %vm214_vm3, %vm215_vm2 }
 0x126   : > { %v210_v19 = vmul.f32 %v380_v17, %v209_v18 }
 0x128   : > { %v211_v20 = vmul.f32 0.5, %v210_v19 }
 0x12a   : > { %v212_v21 = vsub.f32 1.5, %v211_v20 }
 0x12c   : > { %v213_v22 = vmul.f32 %v380_v17, %v212_v21 }
 0x12e   : > { %v217_v24 = vsel %vm216_vm4, %v380_v17, %v213_v22 }
 0x12f   : > { %v218_v25 = vmul.f32 %v217_v24, %v201_v11 }
 0x131   : > { %v223_v27 = vmul.f32 %v375_v23, %v218_v25 }
 0x133   : > { %v228_v28 = vadd.f32 %v376_v26, %v223_v27 }
 0x135   : > { %229 = vst.msk [vmem:[%s187_s16] sm:$0xff] %vm189_vm0, %v228_v28 }
 0x136   : > { %438 = shalt.err (!%p435_p4)
}
 0x137   : > { %330 = dma.vmem_to_hbm [thread:$0]  (%p550_p11), %s244_s11, 128, %s246_s17, %s231_s19  }
 0x138 PF: > { %s257_s26 = sand.u32 1, %s465_s12   ;;  %p649_p7 = scmp.ge.s32.totalorder %s477_s15, 2 }
 0x139   : > { %s258_s4 = scalar_lea.sflag [#allocation4], %s257_s26 }
 0x13a   : > { %p337_p5 = pnand %p649_p7, %p554_p12 }
 0x13c   : > { %p338_p8 = pneg %p337_p5 }
 0x13e   : > { %460 = dma.done.wait (%p338_p8), %s258_s4, 128  }
 0x13f   : > { %462 = vsyncadd (%p338_p8), %s258_s4, 4294967168  ;;  %p16_p10 = scmp.ge.s32.totalorder %s525_s18, 4   ;;  %s650_s12 = smov %s469_s13 }
 0x140   : > { %s651_s13 = smov %s473_s14  ;;  %s652_s14 = smov %s537_s21 }
 0x141   : > { %s653_s15 = smov %s525_s18  ;;  %18 = sbr.rel (!%p16_p10) target bundleno = 5 (0x5), region = 77 }
 0x146   :  { %264 = vsyncpa [#allocation3], 1 }
 0x147   :  { %266 = vsyncpa [#allocation3 + $0x1], 1 }
 0x148   :  { %267 = vsyncpa [#allocation4], 1 }
 0x149   :  { %269 = vsyncpa [#allocation4 + $0x1], 1 }

</bundles_post_ra>
